<compile_context>
chip_gen: v6e
topology: v6e:2x2x1
jax: 0.10.0
libtpu: 0.0.40
codegen_flags: <defaults>
</compile_context>

<pallas_src>
import functools

import jax
import jax.numpy as jnp
from jax.experimental import pallas as pl
from jax.experimental.pallas import tpu as pltpu


def _pwce_kernel(x_ref, t_ref, w_ref, cw_ref, acc_ref, *,
                 ignore_index, s_total, tile_pixels, blocks_per_par):
    """Per-tile fused log-softmax + target gather + weighted accumulation.

    x_ref:   (1, C, TP) logits tile (original dtype)   - classes on sublanes, pixels on lanes
    t_ref:   (1, 1, TP) int32 targets tile
    w_ref:   (1, 1, TP) per-pixel weights tile
    cw_ref:  (C, 1)     per-class weights (whole array, resident)
    acc_ref: (1, 1, 1, 1) float32 partial sum for this (n, par) grid slice
    """
    j = pl.program_id(2)

    @pl.when(j == 0)
    def _():
        acc_ref[...] = jnp.zeros_like(acc_ref)

    # Global pixel offset of this tile (for ragged-tail masking).
    gblk = pl.program_id(1) * blocks_per_par + j
    remaining = s_total - gblk * tile_pixels

    x = x_ref[0].astype(jnp.float32)       # (C, TP)
    t = t_ref[0]                           # (1, TP) int32
    w = w_ref[0].astype(jnp.float32)       # (1, TP)
    cw = cw_ref[...].astype(jnp.float32)   # (C, 1)

    c, tp = x.shape
    lane_ids = jax.lax.broadcasted_iota(jnp.int32, (1, tp), 1)
    lane_valid = lane_ids < remaining                         # (1, TP)

    # Sanitize padded lanes (stale VMEM) so no inf/nan leaks into the reductions.
    x = jnp.where(lane_valid, x, 0.0)
    w = jnp.where(lane_valid, w, 0.0)

    # log-sum-exp over the class (sublane) axis.
    m = jnp.max(x, axis=0, keepdims=True)                     # (1, TP)
    s = jnp.sum(jnp.exp(x - m), axis=0, keepdims=True)        # (1, TP)
    lse = m + jnp.log(s)                                      # (1, TP)

    # One-hot gather of the target class (classes live on sublanes).
    ch = jax.lax.broadcasted_iota(jnp.int32, (c, tp), 0)
    onehot = (ch == t).astype(jnp.float32)                    # (C, TP)

    x_at_t = jnp.sum(onehot * x, axis=0, keepdims=True)       # logits at target class
    cw_at_t = jnp.sum(onehot * cw, axis=0, keepdims=True)     # class weight at target class
    nll = lse - x_at_t                                        # -log_softmax at target class

    valid = lane_valid
    if ignore_index is not None:
        valid = jnp.logical_and(valid, t != ignore_index)

    contrib = jnp.where(valid, (cw_at_t + w) * nll, 0.0)      # (1, TP)
    acc_ref[...] += jnp.sum(contrib)


def pixelwise_cross_entropy_loss(logits, target, pixel_weights, class_weights=None,
                                 ignore_index=None, tile_pixels=1024):
    """Forward pass of PixelWiseCrossEntropyLoss. Returns a float32 scalar."""
    n, c = int(logits.shape[0]), int(logits.shape[1])
    spatial = tuple(int(d) for d in logits.shape[2:])
    s_total = 1
    for d in spatial:
        s_total *= d
    assert target.shape == (n,) + spatial
    assert pixel_weights.shape == target.shape

    # Zero-copy layout: logits stay NC(D)HW, flattened to (N, C, S); no dtype cast in the wrapper.
    x3 = logits.reshape(n, c, s_total)
    t3 = target.reshape(n, 1, s_total).astype(jnp.int32)
    w3 = pixel_weights.reshape(n, 1, s_total)

    if class_weights is None:
        cw = jnp.ones((c, 1), jnp.float32)
    else:
        cw = class_weights.reshape(c, 1).astype(jnp.float32)

    if s_total <= tile_pixels:
        tp = s_total                        # single (possibly non-128-multiple) full block
    else:
        assert tile_pixels % 128 == 0, "tile_pixels must be a multiple of 128"
        tp = tile_pixels

    total_blocks = (s_total + tp - 1) // tp
    n_par = 2 if (total_blocks % 2 == 0 and total_blocks >= 2) else 1   # v7x megacore split
    bpp = total_blocks // n_par

    kernel = functools.partial(
        _pwce_kernel, ignore_index=ignore_index,
        s_total=s_total, tile_pixels=tp, blocks_per_par=bpp)

    pix_map = lambda i, p, j: (i, 0, p * bpp + j)

    partials = pl.pallas_call(
        kernel,
        out_shape=jax.ShapeDtypeStruct((n, n_par, 1, 1), jnp.float32),
        grid_spec=pltpu.PrefetchScalarGridSpec(
            num_scalar_prefetch=0,
            grid=(n, n_par, bpp),
            in_specs=[
                pl.BlockSpec((1, c, tp), pix_map),             # logits
                pl.BlockSpec((1, 1, tp), pix_map),             # targets
                pl.BlockSpec((1, 1, tp), pix_map),             # per-pixel weights
                pl.BlockSpec((c, 1), lambda i, p, j: (0, 0)),  # per-class weights (resident)
            ],
            out_specs=pl.BlockSpec((1, 1, 1, 1), lambda i, p, j: (i, p, 0, 0)),
        ),
        compiler_params=pltpu.CompilerParams(
            dimension_semantics=("parallel", "parallel", "arbitrary")),
    )(x3, t3, w3, cw)

    total = jnp.sum(partials)
    return total / jnp.float32(n * c * s_total)


def _reference(logits, target, pixel_weights, class_weights=None, ignore_index=None):
    """Pure-JAX reference reproducing the PyTorch module semantics."""
    c = logits.shape[1]
    logp = jax.nn.log_softmax(logits.astype(jnp.float32), axis=1)
    if ignore_index is not None:
        valid = (target != ignore_index)
        safe_t = jnp.where(valid, target, 0)
        oh = jax.nn.one_hot(safe_t, c, axis=1, dtype=jnp.float32)
        mask = valid[:, None].astype(jnp.float32)
        oh = oh * mask
        logp = logp * mask
    else:
        oh = jax.nn.one_hot(target, c, axis=1, dtype=jnp.float32)
    if class_weights is None:
        cwv = jnp.ones((c,), jnp.float32)
    else:
        cwv = class_weights.astype(jnp.float32)
    bshape = (1, c) + (1,) * (logits.ndim - 2)
    wtot = cwv.reshape(bshape) + pixel_weights.astype(jnp.float32)[:, None]
    result = -wtot * oh * logp
    return result.mean()


if __name__ == "__main__":
    key = jax.random.PRNGKey(0)
    k_x, k_t, k_w, k_cw, k_x2, k_t2, k_w2 = jax.random.split(key, 7)

    # Test 1: class_weights buffer + ignore_index, tile-exact spatial size (S = 2048).
    N, C, D, H, W = 1, 4, 8, 16, 16
    logits = jax.random.normal(k_x, (N, C, D, H, W), dtype=jnp.float32)
    target = jax.random.randint(k_t, (N, D, H, W), minval=-1, maxval=C, dtype=jnp.int32)
    pix_w = jax.random.uniform(k_w, (N, D, H, W), minval=0.0, maxval=2.0, dtype=jnp.float32)
    cls_w = jax.random.uniform(k_cw, (C,), minval=0.5, maxval=1.5, dtype=jnp.float32)

    loss = pixelwise_cross_entropy_loss(logits, target, pix_w,
                                        class_weights=cls_w, ignore_index=-1)
    jax.block_until_ready(loss)
    ref = _reference(logits, target, pix_w, class_weights=cls_w, ignore_index=-1)
    jax.block_until_ready(ref)
    assert jnp.allclose(loss, ref, rtol=1e-5, atol=1e-6), (loss, ref)

    # Test 2: default class_weights, no ignore_index, ragged tail (S = 300 with 128-pixel tiles).
    N2, C2, D2, H2, W2 = 1, 4, 3, 10, 10
    logits2 = jax.random.normal(k_x2, (N2, C2, D2, H2, W2), dtype=jnp.float32)
    target2 = jax.random.randint(k_t2, (N2, D2, H2, W2), minval=0, maxval=C2, dtype=jnp.int32)
    pix_w2 = jax.random.uniform(k_w2, (N2, D2, H2, W2), minval=0.0, maxval=2.0, dtype=jnp.float32)

    loss2 = pixelwise_cross_entropy_loss(logits2, target2, pix_w2, tile_pixels=128)
    jax.block_until_ready(loss2)
    ref2 = _reference(logits2, target2, pix_w2)
    jax.block_until_ready(ref2)
    assert jnp.allclose(loss2, ref2, rtol=1e-5, atol=1e-6), (loss2, ref2)

    print("KERNEL_OK")
</pallas_src>

<mosaic_0001>
module attributes {stable_mosaic.version = 11 : i64} {
  func.func @_pwce_kernel(%arg0: i32, %arg1: i32, %arg2: i32, %arg3: memref<1x4x1024xf32, #tpu.memory_space<vmem>>, %arg4: memref<1x1x1024xi32, #tpu.memory_space<vmem>>, %arg5: memref<1x1x1024xf32, #tpu.memory_space<vmem>>, %arg6: memref<4x1xf32, #tpu.memory_space<vmem>>, %arg7: memref<1x1x1x1xf32, #tpu.memory_space<vmem>>) attributes {dimension_semantics = [#tpu.dimension_semantics<parallel>, #tpu.dimension_semantics<parallel>, #tpu.dimension_semantics<arbitrary>], iteration_bounds = array<i64: 1, 2, 1>, scalar_prefetch = 0 : i64, scratch_operands = 0 : i64, tpu.core_type = #tpu.core_type<tc>, window_params = [{transform_indices = @transform_0, window_bounds = array<i64: 1, 4, 1024>}, {transform_indices = @transform_1, window_bounds = array<i64: 1, 1, 1024>}, {transform_indices = @transform_2, window_bounds = array<i64: 1, 1, 1024>}, {pipeline_mode = #tpu.pipeline_mode<synchronous>, transform_indices = @transform_3, window_bounds = array<i64: 4, 1>}, {transform_indices = @transform_4, window_bounds = array<i64: 1, 1, 1, 1>}]} {
    %c0_i32 = arith.constant 0 : i32
    %0 = arith.cmpi eq, %arg2, %c0_i32 : i32
    %1 = arith.extui %0 : i1 to i32
    %c0_i32_0 = arith.constant 0 : i32
    %2 = arith.cmpi ne, %1, %c0_i32_0 : i32
    scf.if %2 {
      %cst_26 = arith.constant 0.000000e+00 : f32
      %60 = vector.broadcast %cst_26 : f32 to vector<1x1x1x1xf32>
      %c0_27 = arith.constant 0 : index
      %c0_28 = arith.constant 0 : index
      %c0_29 = arith.constant 0 : index
      %c0_30 = arith.constant 0 : index
      %61 = vector.load %arg7[%c0_27, %c0_28, %c0_29, %c0_30] : memref<1x1x1x1xf32, #tpu.memory_space<vmem>>, vector<1x1x1x1xf32>
      tpu.vector_store %arg7[%c0_27, %c0_28, %c0_29, %c0_30], %60 {strides = array<i32>} : memref<1x1x1x1xf32, #tpu.memory_space<vmem>>, vector<1x1x1x1xf32>,
    } else {
    }
    %c1_i32 = arith.constant 1 : i32
    %3 = arith.muli %arg1, %c1_i32 : i32
    %4 = arith.addi %3, %arg2 : i32
    %c1024_i32 = arith.constant 1024 : i32
    %5 = arith.muli %4, %c1024_i32 : i32
    %c2048_i32 = arith.constant 2048 : i32
    %6 = arith.subi %c2048_i32, %5 : i32
    %c0 = arith.constant 0 : index
    %c0_1 = arith.constant 0 : index
    %c0_2 = arith.constant 0 : index
    %7 = vector.load %arg3[%c0, %c0_1, %c0_2] : memref<1x4x1024xf32, #tpu.memory_space<vmem>>, vector<1x4x1024xf32>
    %8 = vector.shape_cast %7 : vector<1x4x1024xf32> to vector<4x1024xf32>
    %c0_3 = arith.constant 0 : index
    %c0_4 = arith.constant 0 : index
    %c0_5 = arith.constant 0 : index
    %9 = vector.load %arg4[%c0_3, %c0_4, %c0_5] : memref<1x1x1024xi32, #tpu.memory_space<vmem>>, vector<1x1x1024xi32>
    %10 = vector.shape_cast %9 : vector<1x1x1024xi32> to vector<1x1024xi32>
    %c0_6 = arith.constant 0 : index
    %c0_7 = arith.constant 0 : index
    %c0_8 = arith.constant 0 : index
    %11 = vector.load %arg5[%c0_6, %c0_7, %c0_8] : memref<1x1x1024xf32, #tpu.memory_space<vmem>>, vector<1x1x1024xf32>
    %12 = vector.shape_cast %11 : vector<1x1x1024xf32> to vector<1x1024xf32>
    %c0_9 = arith.constant 0 : index
    %c0_10 = arith.constant 0 : index
    %13 = vector.load %arg6[%c0_9, %c0_10] : memref<4x1xf32, #tpu.memory_space<vmem>>, vector<4x1xf32>
    %14 = tpu.iota {dimensions = array<i32: 1>} : vector<1x1024xi32>
    %15 = vector.broadcast %6 : i32 to vector<1x1024xi32>
    %16 = arith.cmpi slt, %14, %15 : vector<1x1024xi32>
    %cst = arith.constant 0.000000e+00 : f32
    %17 = vector.shape_cast %16 : vector<1x1024xi1> to vector<1x1024xi1>
    %18 = vector.broadcast %17 : vector<1x1024xi1> to vector<4x1024xi1>
    %19 = vector.broadcast %cst : f32 to vector<4x1024xf32>
    %20 = arith.select %18, %8, %19 : vector<4x1024xi1>, vector<4x1024xf32>
    %cst_11 = arith.constant 0.000000e+00 : f32
    %21 = vector.broadcast %cst_11 : f32 to vector<1x1024xf32>
    %22 = arith.select %16, %12, %21 : vector<1x1024xi1>, vector<1x1024xf32>
    %cst_12 = arith.constant dense<0xFF800000> : vector<1024xf32>
    %23 = vector.multi_reduction <maximumf>, %20, %cst_12 [0] : vector<4x1024xf32> to vector<1024xf32>
    %24 = vector.shape_cast %23 : vector<1024xf32> to vector<1x1024xf32>
    %25 = vector.broadcast %24 : vector<1x1024xf32> to vector<4x1024xf32>
    %26 = arith.subf %20, %25 : vector<4x1024xf32>
    %27 = math.exp %26 : vector<4x1024xf32>
    %cst_13 = arith.constant dense<0.000000e+00> : vector<1024xf32>
    %28 = vector.multi_reduction <add>, %27, %cst_13 [0] : vector<4x1024xf32> to vector<1024xf32>
    %29 = vector.shape_cast %28 : vector<1024xf32> to vector<1x1024xf32>
    %30 = math.log %29 : vector<1x1024xf32>
    %31 = arith.addf %24, %30 : vector<1x1024xf32>
    %32 = tpu.iota {dimensions = array<i32: 0>} : vector<4x1024xi32>
    %33 = vector.broadcast %10 : vector<1x1024xi32> to vector<4x1024xi32>
    %34 = arith.cmpi eq, %32, %33 : vector<4x1024xi32>
    %35 = arith.extui %34 : vector<4x1024xi1> to vector<4x1024xi32>
    %36 = arith.sitofp %35 : vector<4x1024xi32> to vector<4x1024xf32>
    %37 = arith.mulf %36, %20 : vector<4x1024xf32>
    %cst_14 = arith.constant dense<0.000000e+00> : vector<1024xf32>
    %38 = vector.multi_reduction <add>, %37, %cst_14 [0] : vector<4x1024xf32> to vector<1024xf32>
    %39 = vector.shape_cast %38 : vector<1024xf32> to vector<1x1024xf32>
    %40 = vector.broadcast %13 : vector<4x1xf32> to vector<4x1024xf32>
    %41 = arith.mulf %36, %40 : vector<4x1024xf32>
    %cst_15 = arith.constant dense<0.000000e+00> : vector<1024xf32>
    %42 = vector.multi_reduction <add>, %41, %cst_15 [0] : vector<4x1024xf32> to vector<1024xf32>
    %43 = vector.shape_cast %42 : vector<1024xf32> to vector<1x1024xf32>
    %44 = arith.subf %31, %39 : vector<1x1024xf32>
    %c-1_i32 = arith.constant -1 : i32
    %45 = vector.broadcast %c-1_i32 : i32 to vector<1x1024xi32>
    %46 = arith.cmpi ne, %10, %45 : vector<1x1024xi32>
    %47 = arith.andi %16, %46 : vector<1x1024xi1>
    %48 = arith.addf %43, %22 : vector<1x1024xf32>
    %49 = arith.mulf %48, %44 : vector<1x1024xf32>
    %cst_16 = arith.constant 0.000000e+00 : f32
    %50 = vector.broadcast %cst_16 : f32 to vector<1x1024xf32>
    %51 = arith.select %47, %49, %50 : vector<1x1024xi1>, vector<1x1024xf32>
    %c0_17 = arith.constant 0 : index
    %c0_18 = arith.constant 0 : index
    %c0_19 = arith.constant 0 : index
    %c0_20 = arith.constant 0 : index
    %52 = vector.load %arg7[%c0_17, %c0_18, %c0_19, %c0_20] : memref<1x1x1x1xf32, #tpu.memory_space<vmem>>, vector<1x1x1x1xf32>
    %53 = vector.shape_cast %51 : vector<1x1024xf32> to vector<1x1x1024xf32>
    %cst_21 = arith.constant dense<0.000000e+00> : vector<1xf32>
    %54 = vector.multi_reduction <add>, %53, %cst_21 [1, 2] : vector<1x1x1024xf32> to vector<1xf32>
    %55 = vector.shape_cast %54 : vector<1xf32> to vector<1x1x1xf32>
    %56 = vector.extract %55[0, 0, 0] : f32 from vector<1x1x1xf32>
    %57 = vector.broadcast %56 : f32 to vector<1x1x1x1xf32>
    %58 = arith.addf %52, %57 : vector<1x1x1x1xf32>
    %c0_22 = arith.constant 0 : index
    %c0_23 = arith.constant 0 : index
    %c0_24 = arith.constant 0 : index
    %c0_25 = arith.constant 0 : index
    %59 = vector.load %arg7[%c0_22, %c0_23, %c0_24, %c0_25] : memref<1x1x1x1xf32, #tpu.memory_space<vmem>>, vector<1x1x1x1xf32>
    tpu.vector_store %arg7[%c0_22, %c0_23, %c0_24, %c0_25], %58 {strides = array<i32>} : memref<1x1x1x1xf32, #tpu.memory_space<vmem>>, vector<1x1x1x1xf32>,
    return
  }
  func.func @transform_0(%arg0: i32, %arg1: i32, %arg2: i32) -> (i32, i32, i32) {
    %c1_i32 = arith.constant 1 : i32
    %0 = arith.muli %arg1, %c1_i32 : i32
    %1 = arith.addi %0, %arg2 : i32
    %c0_i32 = arith.constant 0 : i32
    %c0_i32_0 = arith.constant 0 : i32
    return %arg0, %c0_i32, %1 : i32, i32, i32
  }
  func.func @transform_1(%arg0: i32, %arg1: i32, %arg2: i32) -> (i32, i32, i32) {
    %c1_i32 = arith.constant 1 : i32
    %0 = arith.muli %arg1, %c1_i32 : i32
    %1 = arith.addi %0, %arg2 : i32
    %c0_i32 = arith.constant 0 : i32
    %c0_i32_0 = arith.constant 0 : i32
    return %arg0, %c0_i32, %1 : i32, i32, i32
  }
  func.func @transform_2(%arg0: i32, %arg1: i32, %arg2: i32) -> (i32, i32, i32) {
    %c1_i32 = arith.constant 1 : i32
    %0 = arith.muli %arg1, %c1_i32 : i32
    %1 = arith.addi %0, %arg2 : i32
    %c0_i32 = arith.constant 0 : i32
    %c0_i32_0 = arith.constant 0 : i32
    return %arg0, %c0_i32, %1 : i32, i32, i32
  }
  func.func @transform_3(%arg0: i32, %arg1: i32, %arg2: i32) -> (i32, i32) {
    %c0_i32 = arith.constant 0 : i32
    %c0_i32_0 = arith.constant 0 : i32
    %c0_i32_1 = arith.constant 0 : i32
    return %c0_i32, %c0_i32_0 : i32, i32
  }
  func.func @transform_4(%arg0: i32, %arg1: i32, %arg2: i32) -> (i32, i32, i32, i32) {
    %c0_i32 = arith.constant 0 : i32
    %c0_i32_0 = arith.constant 0 : i32
    %c0_i32_1 = arith.constant 0 : i32
    return %arg0, %arg1, %c0_i32, %c0_i32_0 : i32, i32, i32, i32
  }
}

</mosaic_0001>

<bundles_post_ra>
// kernel: tpu_custom_call.1
= control target key start
LH: loop header
LB: loop body
LE: loop exit
PB: predicated region body
PF: predicated region fallthrough
CT: control target
= control target key end

     0   :  { %s2049_s0 = inlined_call_operand.hbm [shape: f32[1,4,2048], index: 0, kind: input, shape index: {}]   ;;  %s2050_s1 = inlined_call_operand.hbm [shape: s32[1,1,2048], index: 1, kind: input, shape index: {}]   ;;  %s2051_s2 = inlined_call_operand.hbm [shape: f32[1,1,2048], index: 2, kind: input, shape index: {}]   ;;  %s2052_s3 = inlined_call_operand.vmem [shape: f32[4,1], index: 3, kind: input, shape index: {}]   ;;  %s2053_s4 = inlined_call_operand.vmem [shape: f32[1,2,1,1], index: 4, kind: output, shape index: {}]  }
   0x1   :  { %2069 = sst [smem:[#allocation20_spill]] %s2050_s1 }
   0x2   :  { %2070 = sst [smem:[#allocation21_spill]] %s2051_s2 }
   0x3   :  { %9 = vsyncpa [#allocation3], 0 }
   0x4   :  { %11 = vsyncpa [#allocation3 + $0x1], 0 }
   0x5   :  { %12 = vsyncpa [#allocation5], 0 }
   0x6   :  { %14 = vsyncpa [#allocation5 + $0x1], 0  ;;  %s1372_s15 = smov 0   ;;  %s1374_s16 = smov 0  }
   0x7   :  { %s1376_s17 = smov 0   ;;  %s1378_s18 = smov 0  }
   0x8   :  { %s1380_s19 = smov 0   ;;  %s1382_s20 = smov 0  }
   0x9 LB: > { %s2054_s21 = sadd.s32 4294967295, %s1340_s20   ;;  %s35_s22 = sadd.s32 1, %s1336_s19  ;;  %s1340_s20 = sphi %s1382_s20, %s20_s20   ;;  %s1336_s19 = sphi %s1380_s19, %s2141_s19   ;;  %s1332_s18 = sphi %s1378_s18, %s2140_s18   ;;  %s1328_s17 = sphi %s1376_s17, %s2139_s17   ;;  %s1324_s16 = sphi %s1374_s16, %s2138_s16   ;;  %s1320_s15 = sphi %s1372_s15, %s2137_s15  }
   0xa   : > { %p37_p0 = scmp.ge.s32.totalorder %s35_s22, 2  ;;  %s50_s23 = sadd.s32 1, %s1328_s17 }
   0xb   : > { %p57_p1 = scmp.ne.s32.totalorder %s1328_s17, %s1324_s16  ;;  %p58_p2 = scmp.eq.s32.totalorder %s1340_s20, 0 }
   0xc   : > { %s2143_s22 = smov (%p37_p0, %s35_s22), 0  ;;  %p63_p4 = scmp.ne.s32.totalorder %s1324_s16, %s1320_s15 }
   0xd   : > { %p59_p3 = por %p58_p2, %p57_p1  ;;  %s46_s24 = ssub.s32 %s1336_s19, %s2143_s22 }
   0xe   : > { %p64_p5 = scmp.eq.s32.totalorder %s2054_s21, 0  ;;  %p48_p6 = scmp.eq.s32.totalorder %s46_s24, 0 }
   0xf   : > { %p1114_p8 = scmp.lt.s32.totalorder %s1340_s20, 2  ;;  %s1422_s27 = sand.u32 1, %s1328_s17  }
  0x10   : > { %p1413_p7 = por %p64_p5, %p63_p4  ;;  %s221_s29 = sand.u32 1, %s1340_s20  }
  0x11   : > { %s1419_s26 = scalar_select %p48_p6, %s1328_s17, %s50_s23  }
  0x12   : > { %p1424_p9 = pnand %p1114_p8, %p59_p3  ;;  %s1072_s30 = sshll.u32 %s1422_s27, 3 }
  0x13   : > { %s1094_s5 = sshll.u32 %s1336_s19, 7  ;;  %s2073_s1 = sld [smem:[#allocation20_spill]] }
  0x14   : > { %s225_s9 = scalar_lea.vmem [#allocation4], %s1072_s30  ;;  %s1436_s11 = scalar_lea.sflag [#allocation5], %s221_s29 }
  0x15   : > { %s236_s10 = sshll.u32 %s225_s9, 4  ;;  %p1204_p10 = pneg %p1424_p9  ;;  %s237_s10 = int_to_ptr.vmem [resolvable:$true] %s236_s10 }
  0x16   : > { %s1215_s12 = scalar_lea.vmem %s237_s10, 128  ;;  %s1342_s13 = smov [#allocation4]  }
  0x17   : > { %p1216_p11 = scmp.ne.s32.totalorder %s237_s10, %s1215_s12  ;;  %s1220_s14 = sshll.u32 %s1342_s13, 4  ;;  %s1221_s14 = int_to_ptr.vmem [resolvable:$false] %s1220_s14 }
  0x18   : > { %s1222_s15 = scalar_lea.vmem %s1221_s14, 256  ;;  %p1223_p0 = scmp.lt.s32.totalorder %s237_s10, %s1221_s14 }
  0x19   : > { %s234_s8 = scalar_lea.hbm %s2073_s1, %s1094_s5  ;;  %p1218_p12 = pnand %p1216_p11, %p1204_p10 }
  0x1a   : > { %p1224_p1 = scmp.lt.s32.totalorder %s1222_s15, %s1215_s12 }
  0x1b   : > { %p1219_p13 = pneg %p1218_p12 }
  0x1c   : > { %p1225_p2 = por %p1224_p1, %p1223_p0 }
  0x1e   : > { %p1226_p3 = pnand %p1225_p2, %p1219_p13 }
  0x20   : > { %1229 = shalt.err (!%p1226_p3)
}
  0x21   : > { %1110 = dma.hbm_to_vmem [thread:$0]  (!%p1424_p9), %s234_s8, 128, %s237_s10, %s1436_s11  }
  0x22   : > { %s2074_s2 = sld [smem:[#allocation21_spill]]  ;;  %p1078_p4 = scmp.ge.s32.totalorder %s1340_s20, 1 }
  0x23   : > { %p263_p5 = scmp.lt.s32.totalorder %s1340_s20, 3  ;;  %s1069_s7 = sshll.u32 %s1422_s27, 5 }
  0x24   : > { %s1093_s9 = sshll.u32 %s1336_s19, 9  ;;  %s203_s15 = scalar_lea.vmem [#allocation2], %s1069_s7 }
  0x25   : > { %p1453_p6 = pnand %p1078_p4, %p263_p5  ;;  %s212_s14 = scalar_lea.hbm %s2049_s0, %s1093_s9 }
  0x26   : > { %s214_s8 = sshll.u32 %s203_s15, 4  ;;  %s247_s10 = scalar_lea.vmem [#allocation6], %s1072_s30  ;;  %s215_s8 = int_to_ptr.vmem [resolvable:$true] %s214_s8 }
  0x27   : > { %s258_s23 = sshll.u32 %s247_s10, 4  ;;  %s1243_s24 = scalar_lea.vmem %s215_s8, 512  ;;  %s259_s23 = int_to_ptr.vmem [resolvable:$true] %s258_s23 }
  0x28   : > { %s1449_s29 = scalar_lea.hbm %s2074_s2, %s1094_s5  ;;  %s200_s5 = scalar_lea.sflag [#allocation3], %s1422_s27 }
  0x29   : > { %p1244_p8 = scmp.ne.s32.totalorder %s215_s8, %s1243_s24  ;;  %s1343_s21 = smov [#allocation2]  }
  0x2a   : > { %s1248_s1 = sshll.u32 %s1343_s21, 4  ;;  %s1249_s1 = int_to_ptr.vmem [resolvable:$false] %s1248_s1 }
  0x2b   : > { %p1246_p11 = pnand %p1244_p8, %p1204_p10  ;;  %s1250_s2 = scalar_lea.vmem %s1249_s1, 1024 }
  0x2c   : > { %p1251_p13 = scmp.lt.s32.totalorder %s215_s8, %s1249_s1  ;;  %p1252_p0 = scmp.lt.s32.totalorder %s1250_s2, %s1243_s24 }
  0x2d   : > { %p1247_p12 = pneg %p1246_p11 }
  0x2e   : > { %p1253_p1 = por %p1252_p0, %p1251_p13 }
  0x30   : > { %p1254_p2 = pnand %p1253_p1, %p1247_p12 }
  0x32   : > { %1257 = shalt.err (!%p1254_p2)
}
  0x33   : > { %1107 = dma.hbm_to_vmem [thread:$0]  (!%p1424_p9), %s212_s14, 512, %s215_s8, %s200_s5  }
  0x34   : > { %s1271_s27 = scalar_lea.vmem %s259_s23, 128  ;;  %s1344_s30 = smov [#allocation6]  }
  0x35   : > { %p1272_p3 = scmp.ne.s32.totalorder %s259_s23, %s1271_s27  ;;  %s1276_s21 = sshll.u32 %s1344_s30, 4  ;;  %s1277_s21 = int_to_ptr.vmem [resolvable:$false] %s1276_s21 }
  0x36   : > { %s1278_s7 = scalar_lea.vmem %s1277_s21, 256  ;;  %p1279_p8 = scmp.lt.s32.totalorder %s259_s23, %s1277_s21 }
  0x37   : > { %p1274_p4 = pnand %p1272_p3, %p1204_p10  ;;  %p1280_p11 = scmp.lt.s32.totalorder %s1278_s7, %s1271_s27 }
  0x39   : > { %p1275_p5 = pneg %p1274_p4  ;;  %p1281_p13 = por %p1280_p11, %p1279_p8 }
  0x3b   : > { %p1282_p12 = pnand %p1281_p13, %p1275_p5 }
  0x3d   : > { %1285 = shalt.err (!%p1282_p12)
}
  0x3e   : > { %1113 = dma.hbm_to_vmem [thread:$0]  (!%p1424_p9), %s1449_s29, 128, %s259_s23, %s1436_s11  }
  0x3f   : > { %267 = sbr.rel (%p1453_p6) target bundleno = 445 (0x1bd), region = 36 }
  0x44   : > { %s1480_s1 = sand.u32 1, %s1324_s16  }
  0x45   : > { %s1079_s2 = sshll.u32 %s1480_s1, 5  ;;  %s270_s9 = scalar_lea.sflag [#allocation3], %s1480_s1 }
  0x46   : > { %s1484_s12 = scalar_lea.vmem [#allocation2], %s1079_s2 }
  0x47   : > { %1311 = dma.done.wait (%p1413_p7), %s270_s9, 512  }
  0x48   : > { %1313 = vsyncadd (%p1413_p7), %s270_s9, 4294966784  ;;  %s2076_s28 = sadd.s32 4294967295, %s1340_s20   ;;  %s1080_s29 = sshll.u32 %s1480_s1, 3 }
  0x49   : > { %s278_s11 = sand.u32 1, %s2076_s28   ;;  %s1495_s13 = scalar_lea.vmem [#allocation4], %s1080_s29 }
  0x4a   : > { %s279_s6 = scalar_lea.sflag [#allocation5], %s278_s11 }
  0x4b   : > { %1315 = dma.done.wait (%p1413_p7), %s279_s6, 256  }
  0x4c   : > { %1317 = vsyncadd (%p1413_p7), %s279_s6, 4294967040  ;;  %v1345_v0 = vmov 0   ;;  %v356_v1 = vld [vmem:[%s2052_s3] sm:$0xf]  ;;  %v357_v2 = vlaneseq  ;;  %s1082_s8 = sshll.u32 %s1332_s18, 10  ;;  %v351_v8 = vld [vmem:[%s1484_s12 + $0x8] sm:$0xff] }
  0x4d   : > { %1165 = vset.pattern.permute.xlu0 %v1345_v0  ;;  %s349_s10 = ssub.s32 2048, %s1082_s8  ;;  %v350_v4 = vld [vmem:[%s1484_s12] sm:$0xff]  ;;  %v396_v12 = vcombine.high %v351_v8, %v351_v8  ;;  %vm460_vm3 = vcmask 1043456   ;;  %v352_v13 = vld [vmem:[%s1484_s12 + $0x10] sm:$0xff]  ;;  %v353_v22 = vld [vmem:[%s1484_s12 + $0x18] sm:$0xff]  ;;  %s291_s25 = scalar_lea.vmem [#allocation6], %s1080_s29 }
  0x4e   : > { %745 = vperm.xlu0 %1165, %v356_v1   ;;  %v1507_v3 = vand.u32 127, %v357_v2  ;;  %v1513_v6 = vstv %s349_s10  ;;  %v395_v10 = vcombine.high %v350_v4, %v350_v4  ;;  %v397_v19 = vcombine.high %v352_v13, %v352_v13  ;;  %p336_p7 = scmp.lt.s32.totalorder %s1332_s18, 1 }
  0x4f   : > { %v398_v29 = vcombine.high %v353_v22, %v353_v22 }
  0x50   : > { %v1511_v5 = vadd.s32 128, %v1507_v3  ;;  %v1516_v7 = vadd.s32 256, %v1507_v3  ;;  %v1520_v9 = vadd.s32 384, %v1507_v3  ;;  %vm367_vm0 = vcmp.lt.s32.totalorder %v1507_v3, %v1513_v6  ;;  %s2145_s18 = smov (!%p336_p7, %s1332_s18), 1 }
  0x51   : > { %v1527_v11 = vadd.s32 512, %v1507_v3  ;;  %v1533_v14 = vadd.s32 640, %v1507_v3  ;;  %v1540_v15 = vsel %vm367_vm0, %v350_v4, 0.0  ;;  %v1548_v17 = vadd.s32 768, %v1507_v3  ;;  %s340_s24 = scalar_lea.vmem %s2053_s4, %s2145_s18 }
  0x52   : > { %vm368_vm1 = vcmp.lt.s32.totalorder %v1511_v5, %v1513_v6  ;;  %vm369_vm2 = vcmp.lt.s32.totalorder %v1516_v7, %v1513_v6  ;;  %vm370_vm4 = vcmp.lt.s32.totalorder %v1520_v9, %v1513_v6  ;;  %v461_v21 = vsel %vm460_vm3, %v1540_v15, -inf }
  0x53   : > { %2077 = vst [vmem:[#allocation9_spill] sm:$0xff] %v1533_v14  ;;  %v1545_v16 = vsel %vm368_vm1, %v395_v10, 0.0  ;;  %2078 = vst [vmem:[#allocation10_spill] sm:$0xff] %v1548_v17  ;;  %v1553_v18 = vsel %vm369_vm2, %v351_v8, 0.0  ;;  %vm371_vm5 = vcmp.lt.s32.totalorder %v1527_v11, %v1513_v6  ;;  %v1560_v20 = vsel %vm370_vm4, %v396_v12, 0.0 }
  0x54   : > { %v1566_v23 = vadd.s32 896, %v1507_v3  ;;  %vm2061_vm6 = vcmp.lt.s32.totalorder %v1533_v14, %v1513_v6  ;;  %v468_v24 = vsel %vm460_vm3, %v1545_v16, -inf  ;;  %v475_v25 = vsel %vm460_vm3, %v1553_v18, -inf }
  0x55   : > { %v1577_v26 = vsel %vm371_vm5, %v352_v13, 0.0  ;;  %v462_v27 = vrot.slane %v461_v21, 4  ;;  %v482_v28 = vsel %vm460_vm3, %v1560_v20, -inf  ;;  %vm2060_vm7 = vcmp.lt.s32.totalorder %v1548_v17, %v1513_v6 }
  0x56   : > { %2079 = vst [vmem:[#allocation11_spill] sm:$0xff] %v1566_v23  ;;  %v1586_v30 = vsel %vm2061_vm6, %v397_v19, 0.0  ;;  %v469_v31 = vrot.slane %v468_v24, 4  ;;  %vm2059_vm8 = vcmp.lt.s32.totalorder %v1566_v23, %v1513_v6  ;;  %v476_v32 = vrot.slane %v475_v25, 4 }
  0x57   : > { %v483_v33 = vrot.slane %v482_v28, 4  ;;  %v489_v34 = vsel %vm460_vm3, %v1577_v26, -inf  ;;  %v1595_v35 = vsel %vm2060_vm7, %v353_v22, 0.0  ;;  %v463_v36 = vmax.f32 %v461_v21, %v462_v27 }
  0x58   : > { %v496_v37 = vsel %vm460_vm3, %v1586_v30, -inf  ;;  %v1602_v38 = vsel %vm2059_vm8, %v398_v29, 0.0  ;;  %v470_v39 = vmax.f32 %v468_v24, %v469_v31  ;;  %v477_v40 = vmax.f32 %v475_v25, %v476_v32 }
  0x59   : > { %v490_v41 = vrot.slane %v489_v34, 4  ;;  %v484_v42 = vmax.f32 %v482_v28, %v483_v33  ;;  %v497_v43 = vrot.slane %v496_v37, 4  ;;  %v503_v44 = vsel %vm460_vm3, %v1595_v35, -inf }
  0x5a   : > { %v464_v45 = vrot.slane %v463_v36, 2  ;;  %v510_v46 = vsel %vm460_vm3, %v1602_v38, -inf  ;;  %v471_v47 = vrot.slane %v470_v39, 2  ;;  %v478_v48 = vrot.slane %v477_v40, 2 }
  0x5b   : > { %v491_v49 = vmax.f32 %v489_v34, %v490_v41  ;;  %v504_v50 = vrot.slane %v503_v44, 4  ;;  %v485_v51 = vrot.slane %v484_v42, 2  ;;  %v498_v52 = vmax.f32 %v496_v37, %v497_v43 }
  0x5c   : > { %v511_v53 = vrot.slane %v510_v46, 4  ;;  %v465_v54 = vmax.f32 %v463_v36, %v464_v45  ;;  %v472_v55 = vmax.f32 %v470_v39, %v471_v47  ;;  %v479_v56 = vmax.f32 %v477_v40, %v478_v48 }
  0x5d   : > { %v492_v57 = vrot.slane %v491_v49, 2  ;;  %v505_v58 = vmax.f32 %v503_v44, %v504_v50  ;;  %v486_v59 = vmax.f32 %v484_v42, %v485_v51  ;;  %v499_v60 = vrot.slane %v498_v52, 2 }
  0x5e   : > { %v512_v61 = vmax.f32 %v510_v46, %v511_v53  ;;  %v466_v62 = vrot.slane %v465_v54, 1  ;;  %v473_v63 = vrot.slane %v472_v55, 1  ;;  %v480_v1 = vrot.slane %v479_v56, 1 }
  0x5f   : > { %v493_v4 = vmax.f32 %v491_v49, %v492_v57  ;;  %v506_v8 = vrot.slane %v505_v58, 2  ;;  %v487_v10 = vrot.slane %v486_v59, 1  ;;  %v500_v12 = vmax.f32 %v498_v52, %v499_v60  ;;  %v1637_v49 = vld [vmem:[%s1495_s13] sm:$0xff] }
  0x60   : > { %v513_v13 = vrot.slane %v512_v61, 2  ;;  %v1608_v19 = vmax.f32 %v465_v54, %v466_v62  ;;  %v1610_v21 = vmax.f32 %v472_v55, %v473_v63  ;;  %v1612_v22 = vmax.f32 %v479_v56, %v480_v1 }
  0x61   : > { %v494_v24 = vrot.slane %v493_v4, 1  ;;  %v507_v25 = vmax.f32 %v505_v58, %v506_v8  ;;  %v1614_v27 = vmax.f32 %v486_v59, %v487_v10  ;;  %v501_v28 = vrot.slane %v500_v12, 1 }
  0x62   : > { %v514_v29 = vmax.f32 %v512_v61, %v513_v13  ;;  %v517_v31 = vsub.f32 %v1540_v15, %v1608_v19  ;;  %v518_v32 = vsub.f32 %v1545_v16, %v1610_v21  ;;  %v519_v36 = vsub.f32 %v1553_v18, %v1612_v22 }
  0x63   : > { %v1620_v33 = vmax.f32 %v493_v4, %v494_v24  ;;  %v508_v34 = vrot.slane %v507_v25, 1  ;;  %v1624_v37 = vmax.f32 %v500_v12, %v501_v28  ;;  %v520_v40 = vsub.f32 %v1560_v20, %v1614_v27 }
  0x64   : > { %v515_v39 = vrot.slane %v514_v29, 1  ;;  %v525_v41 = vmul.f32 1.442695, %v517_v31  ;;  %v527_v42 = vmul.f32 1.442695, %v518_v32  ;;  %v1640_v50 = vshrl.u32 %v357_v2, 7 }
  0x65   : > { %2080 = vst [vmem:[#allocation12_spill] sm:$0xff] %v1624_v37  ;;  %v1628_v43 = vmax.f32 %v507_v25, %v508_v34  ;;  %v521_v44 = vsub.f32 %v1577_v26, %v1620_v33  ;;  %v529_v45 = vmul.f32 1.442695, %v519_v36  ;;  %v522_v47 = vsub.f32 %v1586_v30, %v1624_v37 }
  0x66   : > { %v1632_v46 = vmax.f32 %v514_v29, %v515_v39  ;;  %v531_v48 = vmul.f32 1.442695, %v520_v40  ;;  %1170 = vpow2.f32 %v525_v41  ;;  %vm820_vm9 = vcmp.ne.s32.totalorder %v1637_v49, 4294967295 }
  0x67   : > { %2081 = vst [vmem:[#allocation13_spill] sm:$0xff] %v1628_v43  ;;  %1172 = vpow2.f32 %v527_v42  ;;  %v523_v51 = vsub.f32 %v1595_v35, %v1628_v43  ;;  %v533_v52 = vmul.f32 1.442695, %v521_v44  ;;  %v535_v54 = vmul.f32 1.442695, %v522_v47 }
  0x68   : > { %2082 = vst [vmem:[#allocation14_spill] sm:$0xff] %v1632_v46  ;;  %1174 = vpow2.f32 %v529_v45  ;;  %v524_v53 = vsub.f32 %v1602_v38, %v1632_v46  ;;  %v1648_v55 = vsel %vm820_vm9, 1, %v1345_v0  ;;  %v1651_v2 = vsub.s32 0, %v1640_v50 }
  0x69   : > { %1176 = vpow2.f32 %v531_v48  ;;  %v537_v56 = vmul.f32 1.442695, %v523_v51  ;;  %v1654_v58 = vsub.s32 1, %v1640_v50  ;;  %v1659_v60 = vsub.s32 2, %v1640_v50 }
  0x6a   : > { %1178 = vpow2.f32 %v533_v52  ;;  %v539_v57 = vmul.f32 1.442695, %v524_v53  ;;  %v825_v59 = vrot.slane %v1648_v55, %v1651_v2  ;;  %v2083_v1 = vmov 0 }
  0x6b   : > { %1180 = vpow2.f32 %v535_v54  ;;  %v829_v0 = vrot.slane %v1648_v55, %v1654_v58  ;;  %v833_v61 = vrot.slane %v1648_v55, %v1659_v60  ;;  %v2086_v8 = vmov 0 }
  0x6c   : > { %1182 = vpow2.f32 %v537_v56  ;;  %vm854_vm10 = vcmp.ne.s32.totalorder %v825_v59, 0  ;;  %v2089_v13 = vmov 0  ;;  %v626_v36 = vrot.slane %v1637_v49, %v1651_v2 }
  0x6d   : > { %1184 = vpow2.f32 %v539_v57  ;;  %vm855_vm11 = vcmp.ne.s32.totalorder %v829_v0, 0  ;;  %vm1668_vm12 = vmand %vm367_vm0, %vm854_vm10  ;;  %vm856_vm13 = vcmp.ne.s32.totalorder %v833_v61, 0  ;;  %v1693_v40 = vsub.s32 3, %v1640_v50 }
  0x6e   : > { %v2084_v1 = vsel %vm1668_vm12, 4294967295, %v2083_v1  ;;  %vm1675_vm14 = vmand %vm368_vm1, %vm855_vm11  ;;  %v630_v45 = vrot.slane %v1637_v49, %v1654_v58  ;;  %v634_v47 = vrot.slane %v1637_v49, %v1659_v60  ;;  %v1702_v53 = vsub.s32 4, %v1640_v50 }
  0x6f   : > { %2085 = vst [vmem:[#allocation15_spill] sm:$0xff] %v2084_v1  ;;  %v2087_v8 = vsel %vm1675_vm14, 4294967295, %v2086_v8  ;;  %vm1683_vm15 = vmand %vm369_vm2, %vm856_vm13  ;;  %v1705_v54 = vsub.s32 5, %v1640_v50  ;;  %v1708_v56 = vsub.s32 6, %v1640_v50  ;;  %vm1711_vm9 = vcmp.eq.s32.totalorder %v1640_v50, %v626_v36 }
  0x70   : > { %2088 = vst [vmem:[#allocation16_spill] sm:$0xff] %v2087_v8  ;;  %v2090_v13 = vsel %vm1683_vm15, 4294967295, %v2089_v13  ;;  %v1716_v0 = vsub.s32 7, %v1640_v50  ;;  %vm1722_vm10 = vcmp.eq.s32.totalorder %v1640_v50, %v630_v45  ;;  %vm1727_vm11 = vcmp.eq.s32.totalorder %v1640_v50, %v634_v47 }
  0x71   : > { %2091 = vst [vmem:[#allocation17_spill] sm:$0xff] %v2090_v13  ;;  %v650_v36 = vrot.slane %v1637_v49, %v1708_v56 }
  0x72   : > { %v654_v45 = vrot.slane %v1637_v49, %v1716_v0 }
  0x73   : > { %v1171_v62 = vpop.eup %1170  ;;  %vm661_vm6 = vcmp.eq.s32.totalorder %v1640_v50, %v650_v36 }
  0x74   : > { %v1173_v63 = vpop.eup %1172  ;;  %v541_v12 = vsel %vm460_vm3, %v1171_v62, 0.0 }
  0x75   : > { %v1175_v4 = vpop.eup %1174  ;;  %v548_v24 = vsel %vm460_vm3, %v1173_v63, 0.0  ;;  %v542_v29 = vrot.slane %v541_v12, 4 }
  0x76   : > { %v1177_v10 = vpop.eup %1176  ;;  %v555_v25 = vsel %vm460_vm3, %v1175_v4, 0.0  ;;  %v549_v34 = vrot.slane %v548_v24, 4 }
  0x77   : > { %v1179_v28 = vpop.eup %1178  ;;  %v562_v31 = vsel %vm460_vm3, %v1177_v10, 0.0  ;;  %v556_v39 = vrot.slane %v555_v25, 4  ;;  %v543_v48 = vadd.f32 %v542_v29, %v541_v12  ;;  %v638_v12 = vrot.slane %v1637_v49, %v1693_v40 }
  0x78   : > { %v1181_v32 = vpop.eup %1180  ;;  %v563_v41 = vrot.slane %v562_v31, 4  ;;  %v569_v42 = vsel %vm460_vm3, %v1179_v28, 0.0  ;;  %v550_v57 = vadd.f32 %v549_v34, %v548_v24  ;;  %v646_v34 = vrot.slane %v1637_v49, %v1705_v54 }
  0x79   : > { %v1183_v44 = vpop.eup %1182  ;;  %v576_v51 = vsel %vm460_vm3, %v1181_v32, 0.0  ;;  %v557_v61 = vadd.f32 %v556_v39, %v555_v25  ;;  %v570_v62 = vrot.slane %v569_v42, 4  ;;  %v544_v29 = vrot.slane %v543_v48, 2 }
  0x7a   : > { %v1185_v52 = vpop.eup %1184  ;;  %v564_v63 = vadd.f32 %v563_v41, %v562_v31  ;;  %v577_v4 = vrot.slane %v576_v51, 4  ;;  %v583_v10 = vsel %vm460_vm3, %v1183_v44, 0.0  ;;  %v551_v31 = vrot.slane %v550_v57, 2 }
  0x7b   : > { %v590_v25 = vsel %vm460_vm3, %v1185_v52, 0.0  ;;  %v642_v32 = vrot.slane %v1637_v49, %v1702_v53  ;;  %v558_v39 = vrot.slane %v557_v61, 2  ;;  %v571_v41 = vadd.f32 %v570_v62, %v569_v42 }
  0x7c   : > { %v584_v44 = vrot.slane %v583_v10, 4  ;;  %v565_v47 = vrot.slane %v564_v63, 2  ;;  %v578_v13 = vadd.f32 %v577_v4, %v576_v51  ;;  %v591_v8 = vrot.slane %v590_v25, 4 }
  0x7d   : > { %vm658_vm13 = vcmp.eq.s32.totalorder %v1640_v50, %v638_v12  ;;  %v2064_v52 = vmov 0.0   ;;  %v545_v42 = vadd.f32 %v544_v29, %v543_v48  ;;  %v552_v51 = vadd.f32 %v551_v31, %v550_v57 }
  0x7e   : > { %v1744_v1 = vsel %vm1711_vm9, 1.0, %v2064_v52  ;;  %v1749_v46 = vsel %vm1722_vm10, 1.0, %v2064_v52  ;;  %v1754_v49 = vsel %vm1727_vm11, 1.0, %v2064_v52  ;;  %vm659_vm8 = vcmp.eq.s32.totalorder %v1640_v50, %v642_v32 }
  0x7f   : > { %vm660_vm7 = vcmp.eq.s32.totalorder %v1640_v50, %v646_v34  ;;  %v559_v59 = vadd.f32 %v558_v39, %v557_v61  ;;  %v572_v62 = vrot.slane %v571_v41, 2  ;;  %v585_v4 = vadd.f32 %v584_v44, %v583_v10 }
  0x80   : > { %v1760_v12 = vsel %vm658_vm13, 1.0, %v2064_v52  ;;  %v566_v24 = vadd.f32 %v565_v47, %v564_v63  ;;  %v579_v43 = vrot.slane %v578_v13, 2  ;;  %v592_v37 = vadd.f32 %v591_v8, %v590_v25 }
  0x81   : > { %vm1763_vm9 = vcmp.eq.s32.totalorder %v1640_v50, %v654_v45  ;;  %v546_v48 = vrot.slane %v545_v42, 1  ;;  %v1768_v57 = vsel %vm659_vm8, 1.0, %v2064_v52  ;;  %v1771_v29 = vsel %vm660_vm7, 1.0, %v2064_v52 }
  0x82   : > { %2100 = vst [vmem:[#allocation18_spill] sm:$0xff] %v1768_v57  ;;  %v1774_v61 = vsel %vm661_vm6, 1.0, %v2064_v52  ;;  %v553_v10 = vrot.slane %v552_v51, 1  ;;  %v679_v63 = vmul.f32 %v1744_v1, %v1540_v15  ;;  %v680_v50 = vmul.f32 %v1749_v46, %v1545_v16 }
  0x83   : > { %v681_v8 = vmul.f32 %v1754_v49, %v1553_v18  ;;  %v560_v25 = vrot.slane %v559_v59, 1  ;;  %v573_v31 = vadd.f32 %v572_v62, %v571_v41  ;;  %v586_v32 = vrot.slane %v585_v4, 2 }
  0x84   : > { %v682_v34 = vmul.f32 %v1760_v12, %v1560_v20  ;;  %v567_v36 = vrot.slane %v566_v24, 1  ;;  %v580_v39 = vadd.f32 %v579_v43, %v578_v13  ;;  %v593_v44 = vrot.slane %v592_v37, 2 }
  0x85   : > { %v1787_v45 = vsel %vm1763_vm9, 1.0, %v2064_v52  ;;  %v547_v15 = vadd.f32 %v546_v48, %v545_v42  ;;  %v683_v16 = vmul.f32 %v1768_v57, %v1577_v26  ;;  %v684_v18 = vmul.f32 %v1771_v29, %v1586_v30 }
  0x86   : > { %v685_v41 = vmul.f32 %v1774_v61, %v1595_v35  ;;  %v554_v47 = vadd.f32 %v553_v10, %v552_v51  ;;  %v687_v20 = vsel %vm460_vm3, %v679_v63, 0.0  ;;  %v694_v43 = vsel %vm460_vm3, %v680_v50, 0.0 }
  0x87   : > { %v701_v13 = vsel %vm460_vm3, %v681_v8, 0.0  ;;  %v561_v62 = vadd.f32 %v560_v25, %v559_v59  ;;  %v574_v28 = vrot.slane %v573_v31, 1  ;;  %v587_v52 = vadd.f32 %v586_v32, %v585_v4 }
  0x88   : > { %v708_v42 = vsel %vm460_vm3, %v682_v34, 0.0  ;;  %v568_v48 = vadd.f32 %v567_v36, %v566_v24  ;;  %v581_v26 = vrot.slane %v580_v39, 1  ;;  %v594_v57 = vadd.f32 %v593_v44, %v592_v37 }
  0x89   : > { %v686_v30 = vmul.f32 %v1787_v45, %v1602_v38  ;;  %1186 = vlog2.f32 %v547_v15  ;;  %v688_v35 = vrot.slane %v687_v20, 4  ;;  %v695_v51 = vrot.slane %v694_v43, 4 }
  0x8a   : > { %v702_v10 = vrot.slane %v701_v13, 4  ;;  %1188 = vlog2.f32 %v554_v47  ;;  %v709_v63 = vrot.slane %v708_v42, 4  ;;  %v715_v50 = vsel %vm460_vm3, %v683_v16, 0.0  ;;  %v355_v16 = vld [vmem:[%s291_s25] sm:$0xff] }
  0x8b   : > { %v722_v59 = vsel %vm460_vm3, %v684_v18, 0.0  ;;  %v575_v4 = vadd.f32 %v574_v28, %v573_v31  ;;  %v588_v8 = vrot.slane %v587_v52, 1  ;;  %1190 = vlog2.f32 %v561_v62 }
  0x8c   : > { %v729_v24 = vsel %vm460_vm3, %v685_v41, 0.0  ;;  %v582_v37 = vadd.f32 %v581_v26, %v580_v39  ;;  %v595_v25 = vrot.slane %v594_v57, 1  ;;  %1192 = vlog2.f32 %v568_v48 }
  0x8d   : > { %v736_v38 = vsel %vm460_vm3, %v686_v30, 0.0  ;;  %v689_v32 = vadd.f32 %v688_v35, %v687_v20  ;;  %v716_v34 = vrot.slane %v715_v50, 4  ;;  %v696_v36 = vadd.f32 %v695_v51, %v694_v43 }
  0x8e   : > { %v723_v44 = vrot.slane %v722_v59, 4  ;;  %v730_v15 = vrot.slane %v729_v24, 4  ;;  %v589_v47 = vadd.f32 %v588_v8, %v587_v52  ;;  %1194 = vlog2.f32 %v575_v4 }
  0x8f   : > { %v703_v31 = vadd.f32 %v702_v10, %v701_v13  ;;  %v737_v18 = vrot.slane %v736_v38, 4  ;;  %v596_v62 = vadd.f32 %v595_v25, %v594_v57  ;;  %1196 = vlog2.f32 %v582_v37 }
  0x90   : > { %v710_v41 = vadd.f32 %v709_v63, %v708_v42  ;;  %v690_v39 = vrot.slane %v689_v32, 2  ;;  %v717_v28 = vadd.f32 %v716_v34, %v715_v50  ;;  %v415_v48 = vrot.slane %v355_v16, %v1651_v2 }
  0x91   : > { %v697_v26 = vrot.slane %v696_v36, 2  ;;  %v724_v20 = vadd.f32 %v723_v44, %v722_v59  ;;  %v731_v30 = vadd.f32 %v730_v15, %v729_v24  ;;  %v419_v43 = vrot.slane %v355_v16, %v1654_v58 }
  0x92   : > { %1198 = vlog2.f32 %v589_v47  ;;  %v704_v35 = vrot.slane %v703_v31, 2  ;;  %v738_v51 = vadd.f32 %v737_v18, %v736_v38  ;;  %v423_v52 = vrot.slane %v355_v16, %v1659_v60 }
  0x93   : > { %1200 = vlog2.f32 %v596_v62  ;;  %v711_v13 = vrot.slane %v710_v41, 2  ;;  %v427_v57 = vrot.slane %v355_v16, %v1693_v40  ;;  %v691_v10 = vadd.f32 %v690_v39, %v689_v32 }
  0x94   : > { %v718_v42 = vrot.slane %v717_v28, 2  ;;  %v1814_v2 = vsel %vm367_vm0, %v415_v48, 0.0  ;;  %v698_v50 = vadd.f32 %v697_v26, %v696_v36  ;;  %v725_v59 = vrot.slane %v724_v20, 2 }
  0x95   : > { %v732_v58 = vrot.slane %v731_v30, 2  ;;  %v431_v8 = vrot.slane %v355_v16, %v1702_v53  ;;  %v1820_v60 = vsel %vm368_vm1, %v419_v43, 0.0  ;;  %v705_v24 = vadd.f32 %v704_v35, %v703_v31 }
  0x96   : > { %v1187_v63 = vpop.eup %1186  ;;  %v739_v37 = vrot.slane %v738_v51, 2  ;;  %v435_v38 = vrot.slane %v355_v16, %v1705_v54  ;;  %v439_v3 = vrot.slane %v355_v16, %v1708_v56  ;;  %v1827_v32 = vsel %vm369_vm2, %v423_v52, 0.0 }
  0x97   : > { %v1189_v4 = vpop.eup %1188  ;;  %v712_v34 = vadd.f32 %v711_v13, %v710_v41  ;;  %v443_v44 = vrot.slane %v355_v16, %v1716_v0  ;;  %v1833_v5 = vsel %vm370_vm4, %v427_v57, 0.0  ;;  %v692_v15 = vrot.slane %v691_v10, 1 }
  0x98   : > { %v1191_v25 = vpop.eup %1190  ;;  %v719_v47 = vadd.f32 %v718_v42, %v717_v28  ;;  %v598_v31 = vmul.f32 0.6931472, %v1187_v63  ;;  %v699_v18 = vrot.slane %v698_v50, 1  ;;  %v726_v62 = vadd.f32 %v725_v59, %v724_v20 }
  0x99   : > { %v1193_v36 = vpop.eup %1192  ;;  %v733_v39 = vadd.f32 %v732_v58, %v731_v30  ;;  %v1838_v7 = vsel %vm371_vm5, %v431_v8, 0.0  ;;  %v600_v41 = vmul.f32 0.6931472, %v1189_v4  ;;  %v706_v48 = vrot.slane %v705_v24, 1 }
  0x9a   : > { %v740_v26 = vadd.f32 %v739_v37, %v738_v51  ;;  %vm2101_vm0 = vcmp.lt.s32.totalorder %v1533_v14, %v1513_v6  ;;  %v602_v35 = vmul.f32 0.6931472, %v1191_v25  ;;  %v604_v28 = vmul.f32 0.6931472, %v1193_v36 }
  0x9b   : > { %v1195_v16 = vpop.eup %1194  ;;  %v1843_v43 = vsel %vm2101_vm0, %v435_v38, 0.0  ;;  %v713_v52 = vrot.slane %v712_v34, 1  ;;  %vm2102_vm1 = vcmp.lt.s32.totalorder %v1548_v17, %v1513_v6  ;;  %vm2103_vm2 = vcmp.lt.s32.totalorder %v1566_v23, %v1513_v6 }
  0x9c   : > { %v1197_v13 = vpop.eup %1196  ;;  %v1848_v20 = vsel %vm2102_vm1, %v439_v3, 0.0  ;;  %v1853_v30 = vsel %vm2103_vm2, %v443_v44, 0.0  ;;  %v1855_v51 = vadd.f32 %v692_v15, %v691_v10  ;;  %v720_v57 = vrot.slane %v719_v47, 1  ;;  %vm2133_vm11 = vmmov %vm2102_vm1 }
  0x9d   : > { %2104 = vst [vmem:[#allocation19_spill] sm:$0xff] %v1853_v30  ;;  %v1858_v42 = vadd.f32 %v598_v31, %v1608_v19  ;;  %v1860_v63 = vadd.f32 %v699_v18, %v698_v50  ;;  %v727_v59 = vrot.slane %v726_v62, 1  ;;  %v734_v58 = vrot.slane %v733_v39, 1  ;;  %vm2135_vm9 = vmmov %vm2103_vm2 }
  0x9e   : > { %v606_v4 = vmul.f32 0.6931472, %v1195_v16  ;;  %v1863_v8 = vadd.f32 %v600_v41, %v1610_v21  ;;  %v1865_v37 = vadd.f32 %v706_v48, %v705_v24  ;;  %v741_v25 = vrot.slane %v740_v26, 1 }
  0x9f   : > { %v1199_v38 = vpop.eup %1198  ;;  %v608_v3 = vmul.f32 0.6931472, %v1197_v13  ;;  %v1868_v10 = vadd.f32 %v602_v35, %v1612_v22  ;;  %v1871_v36 = vadd.f32 %v604_v28, %v1614_v27  ;;  %v1873_v19 = vadd.f32 %v713_v52, %v712_v34 }
  0xa0   : > { %v1201_v50 = vpop.eup %1200  ;;  %v1875_v44 = vadd.f32 %v720_v57, %v719_v47  ;;  %v837_v21 = vrot.slane %v1648_v55, %v1693_v40  ;;  %v1883_v31 = vadd.f32 %v727_v59, %v726_v62  ;;  %v1885_v22 = vadd.f32 %v734_v58, %v733_v39  ;;  %v2105_v39 = vld [vmem:[#allocation12_spill] sm:$0xff]  ;;  %v2106_v57 = vld [vmem:[#allocation18_spill] sm:$0xff] }
  0xa1   : > { %v1891_v47 = vmul.f32 0.6931472, %v1199_v38  ;;  %v1894_v40 = vadd.f32 %v606_v4, %v1620_v33  ;;  %v1896_v18 = vadd.f32 %v741_v25, %v740_v26  ;;  %v1900_v48 = vmul.f32 0.6931472, %v1201_v50 }
  0xa2   : > { %v1903_v16 = vadd.f32 %v608_v3, %v2105_v39  ;;  %vm895_vm6 = vcmask 1040384   ;;  %vm345_vm1 = vcmask 0   ;;  %v2136_v6 = vmov 0.0  }
  0xa3   : > { %346 = vst.msk [vmem:[%s340_s24] sm:$0x1] %vm345_vm1, %v2136_v6 }
  0xc9   : > { %v746_v62 = vpop.permute.xlu0 %745 }
  0xca   : > { %v748_v33 = vmul.f32 %v1744_v1, %v746_v62  ;;  %v749_v26 = vmul.f32 %v1749_v46, %v746_v62  ;;  %v750_v52 = vmul.f32 %v1754_v49, %v746_v62  ;;  %v751_v13 = vmul.f32 %v1760_v12, %v746_v62 }
  0xcb   : > { %v752_v59 = vmul.f32 %v2106_v57, %v746_v62  ;;  %v753_v58 = vmul.f32 %v1771_v29, %v746_v62  ;;  %v754_v4 = vmul.f32 %v1774_v61, %v746_v62  ;;  %v755_v25 = vmul.f32 %v1787_v45, %v746_v62 }
  0xcc   : > { %v756_v38 = vsel %vm460_vm3, %v748_v33, 0.0  ;;  %v763_v3 = vsel %vm460_vm3, %v749_v26, 0.0  ;;  %v770_v1 = vsel %vm460_vm3, %v750_v52, 0.0  ;;  %v777_v46 = vsel %vm460_vm3, %v751_v13, 0.0 }
  0xcd   : > { %v757_v50 = vrot.slane %v756_v38, 4  ;;  %v764_v49 = vrot.slane %v763_v3, 4  ;;  %v771_v39 = vrot.slane %v770_v1, 4  ;;  %v778_v12 = vrot.slane %v777_v46, 4 }
  0xce   : > { %v784_v57 = vsel %vm460_vm3, %v752_v59, 0.0  ;;  %v791_v29 = vsel %vm460_vm3, %v753_v58, 0.0  ;;  %v798_v61 = vsel %vm460_vm3, %v754_v4, 0.0  ;;  %v805_v45 = vsel %vm460_vm3, %v755_v25, 0.0 }
  0xcf   : > { %v758_v62 = vadd.f32 %v757_v50, %v756_v38  ;;  %v765_v33 = vadd.f32 %v764_v49, %v763_v3  ;;  %v772_v34 = vadd.f32 %v771_v39, %v770_v1  ;;  %v779_v26 = vadd.f32 %v778_v12, %v777_v46 }
  0xd0   : > { %v785_v15 = vrot.slane %v784_v57, 4  ;;  %v792_v52 = vrot.slane %v791_v29, 4  ;;  %v799_v28 = vrot.slane %v798_v61, 4  ;;  %v806_v13 = vrot.slane %v805_v45, 4 }
  0xd1   : > { %v759_v35 = vrot.slane %v758_v62, 2  ;;  %v766_v41 = vrot.slane %v765_v33, 2  ;;  %v773_v27 = vrot.slane %v772_v34, 2  ;;  %v780_v24 = vrot.slane %v779_v26, 2 }
  0xd2   : > { %v786_v23 = vadd.f32 %v785_v15, %v784_v57  ;;  %v793_v59 = vadd.f32 %v792_v52, %v791_v29  ;;  %v800_v17 = vadd.f32 %v799_v28, %v798_v61  ;;  %v807_v58 = vadd.f32 %v806_v13, %v805_v45 }
  0xd3   : > { %v760_v14 = vadd.f32 %v759_v35, %v758_v62  ;;  %v767_v4 = vadd.f32 %v766_v41, %v765_v33  ;;  %v774_v30 = vadd.f32 %v773_v27, %v772_v34  ;;  %v781_v25 = vadd.f32 %v780_v24, %v779_v26 }
  0xd4   : > { %vm1925_vm3 = vcmp.ne.s32.totalorder %v837_v21, 0  ;;  %v787_v3 = vrot.slane %v786_v23, 2  ;;  %v794_v1 = vrot.slane %v793_v59, 2  ;;  %v801_v46 = vrot.slane %v800_v17, 2 }
  0xd5   : > { %v808_v50 = vrot.slane %v807_v58, 2  ;;  %v761_v49 = vrot.slane %v760_v14, 1  ;;  %v768_v39 = vrot.slane %v767_v4, 1  ;;  %v775_v12 = vrot.slane %v774_v30, 1  ;;  %vm1977_vm10 = vmand %vm370_vm4, %vm1925_vm3 }
  0xd6   : > { %v782_v15 = vrot.slane %v781_v25, 1  ;;  %v2109_v28 = vrot.slane %v1648_v55, %v1702_v53  ;;  %v788_v21 = vadd.f32 %v787_v3, %v786_v23  ;;  %v795_v24 = vadd.f32 %v794_v1, %v793_v59  ;;  %v2112_v23 = vld [vmem:[#allocation13_spill] sm:$0xff]  ;;  %v2116_v3 = vld [vmem:[#allocation14_spill] sm:$0xff] }
  0xd7   : > { %v802_v27 = vadd.f32 %v801_v46, %v800_v17  ;;  %v809_v34 = vadd.f32 %v808_v50, %v807_v58  ;;  %v762_v35 = vadd.f32 %v761_v49, %v760_v14  ;;  %v769_v57 = vadd.f32 %v768_v39, %v767_v4 }
  0xd8   : > { %vm1932_vm7 = vcmp.ne.s32.totalorder %v2109_v28, 0  ;;  %v776_v29 = vadd.f32 %v775_v12, %v774_v30  ;;  %v783_v61 = vadd.f32 %v782_v15, %v781_v25  ;;  %v789_v45 = vrot.slane %v788_v21, 1 }
  0xd9   : > { %v796_v62 = vrot.slane %v795_v24, 1  ;;  %v803_v33 = vrot.slane %v802_v27, 1  ;;  %v810_v26 = vrot.slane %v809_v34, 1  ;;  %v870_v52 = vadd.f32 %v762_v35, %v1814_v2  ;;  %vm1995_vm4 = vmand %vm371_vm5, %vm1932_vm7 }
  0xda   : > { %v871_v53 = vadd.f32 %v769_v57, %v1820_v60  ;;  %v872_v13 = vadd.f32 %v776_v29, %v1827_v32  ;;  %v873_v28 = vadd.f32 %v783_v61, %v1833_v5  ;;  %v619_v17 = vadd.f32 %v1891_v47, %v2112_v23 }
  0xdb   : > { %v790_v59 = vadd.f32 %v789_v45, %v788_v21  ;;  %v797_v14 = vadd.f32 %v796_v62, %v795_v24  ;;  %v804_v58 = vadd.f32 %v803_v33, %v802_v27  ;;  %v816_v30 = vsub.f32 %v1894_v40, %v1875_v44 }
  0xdc   : > { %v2113_v4 = vsub.f32 %v1858_v42, %v1855_v51  ;;  %v2114_v2 = vsub.f32 %v1863_v8, %v1860_v63  ;;  %v2115_v32 = vsub.f32 %v1868_v10, %v1865_v37  ;;  %v620_v47 = vadd.f32 %v1900_v48, %v2116_v3 }
  0xdd   : > { %v811_v1 = vadd.f32 %v810_v26, %v809_v34  ;;  %v817_v46 = vsub.f32 %v1903_v16, %v1883_v31  ;;  %v874_v44 = vadd.f32 %v790_v59, %v1838_v7  ;;  %v875_v51 = vadd.f32 %v797_v14, %v1843_v43 }
  0xde   : > { %v878_v25 = vmul.f32 %v870_v52, %v2113_v4  ;;  %v879_v60 = vmul.f32 %v871_v53, %v2114_v2  ;;  %v880_v5 = vmul.f32 %v872_v13, %v2115_v32  ;;  %v2117_v42 = vsub.f32 %v1871_v36, %v1873_v19  ;;  %v894_v2 = vld [vmem:[%s340_s24] sm:$0x1] }
  0xdf   : > { %v818_v48 = vsub.f32 %v619_v17, %v1885_v22  ;;  %v853_v50 = vrot.slane %v1648_v55, %v1716_v0  ;;  %v2120_v7 = vrot.slane %v1648_v55, %v1705_v54  ;;  %v876_v36 = vadd.f32 %v804_v58, %v1848_v20  ;;  %v2127_v20 = vld [vmem:[#allocation19_spill] sm:$0xff] }
  0xe0   : > { %v881_v63 = vmul.f32 %v873_v28, %v2117_v42  ;;  %v886_v40 = vsel %vm1668_vm12, %v878_v25, 0.0  ;;  %v887_v10 = vsel %vm1675_vm14, %v879_v60, 0.0  ;;  %v882_v19 = vmul.f32 %v874_v44, %v816_v30  ;;  %vm2129_vm14 = vmmov %vm2101_vm0 }
  0xe1   : > { %vm859_vm8 = vcmp.ne.s32.totalorder %v2120_v7, 0  ;;  %v888_v22 = vsel %vm1683_vm15, %v880_v5, 0.0  ;;  %v896_v0 = vsel %vm895_vm6, %v886_v40, 0.0  ;;  %v897_v54 = vsel %vm895_vm6, %v887_v10, 0.0 }
  0xe2   : > { %v819_v16 = vsub.f32 %v620_v47, %v1896_v18  ;;  %v2124_v38 = vrot.slane %v1648_v55, %v1708_v56  ;;  %v877_v49 = vadd.f32 %v811_v1, %v2127_v20  ;;  %v883_v39 = vmul.f32 %v875_v51, %v817_v46  ;;  %vm2005_vm15 = vmand %vm2129_vm14, %vm859_vm8 }
  0xe3   : > { %v889_v12 = vsel %vm1977_vm10, %v881_v63, 0.0  ;;  %v898_v18 = vadd.f32 %v897_v54, %v896_v0  ;;  %v899_v11 = vsel %vm895_vm6, %v888_v22, 0.0  ;;  %vm861_vm5 = vcmp.ne.s32.totalorder %v853_v50, 0 }
  0xe4   : > { %vm860_vm12 = vcmp.ne.s32.totalorder %v2124_v38, 0  ;;  %v884_v56 = vmul.f32 %v876_v36, %v818_v48  ;;  %v890_v41 = vsel %vm1995_vm4, %v882_v19, 0.0  ;;  %v901_v27 = vsel %vm895_vm6, %v889_v12, 0.0  ;;  %vm869_vm0 = vmand %vm2135_vm9, %vm861_vm5 }
  0xe5   : > { %v900_v21 = vadd.f32 %v899_v11, %v898_v18  ;;  %vm868_vm13 = vmand %vm2133_vm11, %vm860_vm12  ;;  %v885_v34 = vmul.f32 %v877_v49, %v819_v16  ;;  %v891_v35 = vsel %vm2005_vm15, %v883_v39, 0.0  ;;  %v903_v61 = vsel %vm895_vm6, %v890_v41, 0.0 }
  0xe6   : > { %v892_v45 = vsel %vm868_vm13, %v884_v56, 0.0  ;;  %v905_v33 = vsel %vm895_vm6, %v891_v35, 0.0 }
  0xe7   : > { %v902_v57 = vadd.f32 %v901_v27, %v900_v21  ;;  %v893_v26 = vsel %vm869_vm0, %v885_v34, 0.0  ;;  %v907_v53 = vsel %vm895_vm6, %v892_v45, 0.0 }
  0xe8   : > { %v909_v28 = vsel %vm895_vm6, %v893_v26, 0.0 }
  0xe9   : > { %v904_v62 = vadd.f32 %v903_v61, %v902_v57 }
  0xeb   : > { %v906_v52 = vadd.f32 %v905_v33, %v904_v62 }
  0xed   : > { %v908_v13 = vadd.f32 %v907_v53, %v906_v52 }
  0xef   : > { %v910_v23 = vadd.f32 %v909_v28, %v908_v13 }
  0xf1   : > { %911 = vadd.xlane.f32.xlu0 %v910_v23 }
 0x17a   : > { %v912_v17 = vpop.xlane.xlu0 %911 }
 0x17b   : > { %v913_v59 = vrot.slane %v912_v17, 4 }
 0x17d   : > { %v914_v14 = vadd.f32 %v913_v59, %v912_v17 }
 0x17f   : > { %v915_v58 = vrot.slane %v914_v14, 2 }
 0x181   : > { %v916_v30 = vadd.f32 %v915_v58, %v914_v14 }
 0x183   : > { %v917_v4 = vrot.slane %v916_v30, 1 }
 0x185   : > { %v918_v25 = vadd.f32 %v917_v4, %v916_v30 }
 0x187   : > { %1096 = vpush %v918_v25 }
 0x1b8   : > { %s1097_s27 = spop %1096 }
 0x1b9   : > { %v920_v60 = vstv %s1097_s27 }
 0x1ba   : > { %v921_v32 = vadd.f32 %v920_v60, %v894_v2 }
 0x1bc   : > { %923 = vst.msk [vmem:[%s340_s24] sm:$0x1] %vm345_vm1, %v921_v32 }
 0x1bd PF: > { %s20_s20 = sadd.s32 1, %s1340_s20   ;;  %s2137_s15 = smov %s1324_s16 }
 0x1be   : > { %p17_p9 = scmp.ge.s32.totalorder %s20_s20, 4   ;;  %s2138_s16 = smov %s1328_s17 }
 0x1bf   : > { %s2139_s17 = smov %s1419_s26  ;;  %s2140_s18 = smov %s1336_s19 }
 0x1c0   : > { %s2141_s19 = smov %s2143_s22  ;;  %19 = sbr.rel (!%p17_p9) target bundleno = 9 (0x9), region = 104 }
 0x1c5   :  { %949 = vsyncpa [#allocation3], 1 }
 0x1c6   :  { %951 = vsyncpa [#allocation3 + $0x1], 1 }
 0x1c7   :  { %952 = vsyncpa [#allocation5], 1 }
 0x1c8   :  { %954 = vsyncpa [#allocation5 + $0x1], 1 }

</bundles_post_ra>
